<compile_context>
chip_gen: v5e
topology: v5e:2x2
jax: 0.10.0
libtpu: 0.0.40
codegen_flags: <defaults>
</compile_context>

<pallas_src>
from typing import NamedTuple

import jax
import jax.numpy as jnp
from jax.experimental import pallas as pl
from jax.experimental.pallas import tpu as pltpu


def _round_up(x, m):
    return ((x + m - 1) // m) * m


def _round_down(x, m):
    return (x // m) * m


# ----------------------------- tiling policy --------------------------------

_DEF_TM = 256            # row tile (multiple of 16)
_DEF_TN = 1024           # lane-dense output tile (multiple of 128)
_DEF_TK = 1024           # reduction tile when K does not fit a single tile
_MAX_SINGLE_K = 2048     # padded K <= this -> collapse the reduction grid axis
_LANE = 128
_ROW_ALIGN = 16          # bf16 sublane packing
_VMEM_CAP = 48 * 1024 * 1024   # stay well below v7x's 64 MiB per-TC VMEM


def _divisor_tile(total, request, unit):
    """Largest multiple of `unit` that divides `total` and is <= request."""
    cap = max(unit, min(_round_down(request, unit), total))
    t = cap
    while t >= unit:
        if total % t == 0:
            return t
        t -= unit
    return unit


def _choose_tn(n_pad, tn_req):
    tn = _divisor_tile(n_pad, tn_req, _LANE)
    # Megacore (v7x has 2 TCs): keep >= 2 grid steps on the N axis if possible.
    if tn == n_pad and n_pad >= 2 * _LANE:
        tn = _divisor_tile(n_pad, n_pad // 2, _LANE)
    return tn


def _choose_tk(k_pad, tk_req, max_single_k):
    if k_pad <= max_single_k:
        return k_pad
    return _divisor_tile(k_pad, tk_req, _LANE)


# ------------------------------ weight prep ---------------------------------

class RanPACWeight(NamedTuple):
    w_chunks: jax.Array   # (grid_n, k_pad, tn), compute dtype, contiguous tiles
    input_dim: int
    output_dim: int
    k_pad: int
    n_pad: int
    tn: int
    tk: int


def init_ranpac_weight(key, input_dim, output_dim, lambda_value):
    """Re-creates RanPACLayer.__init__ parameter setup (PyTorch layout)."""
    w = jax.random.normal(key, (output_dim, input_dim), dtype=jnp.float32)
    return w * (jnp.sqrt(jnp.float32(output_dim)) * jnp.float32(lambda_value))


def prepare_ranpac_weight(weight, *, compute_dtype=jnp.bfloat16,
                          tn=_DEF_TN, tk=_DEF_TK, max_single_k=_MAX_SINGLE_K):
    """One-time prep of the frozen weight: transpose, cast, pad, chunk."""
    n, k = weight.shape                      # (output_dim, input_dim)
    k_pad = _round_up(k, _LANE)
    n_pad = _round_up(n, _LANE)
    tn = _choose_tn(n_pad, tn)
    tk = _choose_tk(k_pad, tk, max_single_k)

    w_t = jnp.transpose(weight).astype(compute_dtype)     # (K, N), once
    if (k_pad, n_pad) != (k, n):
        w_t = jnp.pad(w_t, ((0, k_pad - k), (0, n_pad - n)))
    grid_n = n_pad // tn
    # Pre-chunk so each (k_pad, tn) weight tile is one contiguous HBM slab.
    w_chunks = w_t.reshape(k_pad, grid_n, tn).transpose(1, 0, 2)
    return RanPACWeight(w_chunks, k, n, k_pad, n_pad, tn, tk)


# -------------------------------- kernels ------------------------------------

def _ranpac_single_k_kernel(x_ref, w_ref, o_ref):
    # Whole reduction dim in one tile: no accumulator, no init/finalize.
    x = x_ref[...].astype(w_ref.dtype)       # cast in-kernel (no extra HBM pass)
    o_ref[...] = jnp.dot(
        x, w_ref[...], preferred_element_type=jnp.float32
    ).astype(o_ref.dtype)


def _ranpac_tiled_k_f32_kernel(x_ref, w_ref, o_ref):
    # Output block is f32 and resident across the k axis: accumulate into it.
    @pl.when(pl.program_id(2) == 0)
    def _():
        o_ref[...] = jnp.zeros_like(o_ref)

    x = x_ref[...].astype(w_ref.dtype)
    o_ref[...] += jnp.dot(x, w_ref[...], preferred_element_type=jnp.float32)


def _ranpac_tiled_k_acc_kernel(x_ref, w_ref, o_ref, acc_ref):
    # Narrow output dtype: keep an f32 scratch accumulator, cast at the end.
    @pl.when(pl.program_id(2) == 0)
    def _():
        acc_ref[...] = jnp.zeros_like(acc_ref)

    x = x_ref[...].astype(w_ref.dtype)
    acc_ref[...] += jnp.dot(x, w_ref[...], preferred_element_type=jnp.float32)

    @pl.when(pl.program_id(2) == pl.num_programs(2) - 1)
    def _():
        o_ref[...] = acc_ref[...].astype(o_ref.dtype)


# ------------------------------ host wrapper ---------------------------------

def ranpac_forward(x, prepared: RanPACWeight, *, tm=_DEF_TM,
                   out_dtype=jnp.float32):
    """x: (M, input_dim). Returns y = x @ W.T with shape (M, output_dim)."""
    m, k = x.shape
    assert k == prepared.input_dim, (
        f"x feature dim {k} != prepared input_dim {prepared.input_dim}")
    k_pad, n_pad = prepared.k_pad, prepared.n_pad
    tn, tk = prepared.tn, prepared.tk
    w_chunks = prepared.w_chunks

    # Row tiling (multiples of 16 for bf16 sublane packing).
    tm = max(_ROW_ALIGN, _round_down(tm, _ROW_ALIGN))
    m_pad = _round_up(m, _ROW_ALIGN)
    if m_pad <= tm:
        tm = m_pad
    else:
        m_pad = _round_up(m, tm)

    x_p = x
    if (m_pad, k_pad) != (m, k):
        x_p = jnp.pad(x_p, ((0, m_pad - m), (0, k_pad - k)))

    grid_m = m_pad // tm
    grid_n = n_pad // tn
    grid_k = k_pad // tk
    single_k = grid_k == 1

    xb = jnp.dtype(x_p.dtype).itemsize
    wb = jnp.dtype(w_chunks.dtype).itemsize
    ob = jnp.dtype(out_dtype).itemsize
    f32_out = jnp.dtype(out_dtype) == jnp.dtype(jnp.float32)

    work = 2 * (tm * tk * xb + tk * tn * wb + tm * tn * ob)   # double-buffered
    if not single_k and not f32_out:
        work += tm * tn * 4                                    # scratch acc
    vmem_limit = int(min(max(2 * work, 32 * 1024 * 1024), _VMEM_CAP))

    cost = pl.CostEstimate(
        flops=2 * m_pad * n_pad * k_pad,
        transcendentals=0,
        bytes_accessed=(m_pad * k_pad * xb + k_pad * n_pad * wb
                        + m_pad * n_pad * ob),
    )
    out_shape = jax.ShapeDtypeStruct((m_pad, n_pad), out_dtype)

    if single_k:
        # N outer / M inner: the weight tile's block index is constant along
        # the inner axis, so W is streamed from HBM exactly once.
        y = pl.pallas_call(
            _ranpac_single_k_kernel,
            out_shape=out_shape,
            grid_spec=pltpu.PrefetchScalarGridSpec(
                num_scalar_prefetch=0,
                grid=(grid_n, grid_m),
                in_specs=[
                    pl.BlockSpec((tm, k_pad), lambda j, i: (i, 0)),
                    pl.BlockSpec((None, k_pad, tn), lambda j, i: (j, 0, 0)),
                ],
                out_specs=pl.BlockSpec((tm, tn), lambda j, i: (i, j)),
            ),
            compiler_params=pltpu.CompilerParams(
                dimension_semantics=("parallel", "parallel"),
                vmem_limit_bytes=vmem_limit,
            ),
            cost_estimate=cost,
        )(x_p, w_chunks)
    else:
        if f32_out:
            kernel = _ranpac_tiled_k_f32_kernel
            scratch = []
        else:
            kernel = _ranpac_tiled_k_acc_kernel
            scratch = [pltpu.VMEM((tm, tn), jnp.float32)]
        y = pl.pallas_call(
            kernel,
            out_shape=out_shape,
            grid_spec=pltpu.PrefetchScalarGridSpec(
                num_scalar_prefetch=0,
                grid=(grid_n, grid_m, grid_k),
                in_specs=[
                    pl.BlockSpec((tm, tk), lambda j, i, kk: (i, kk)),
                    pl.BlockSpec((None, tk, tn), lambda j, i, kk: (j, kk, 0)),
                ],
                out_specs=pl.BlockSpec((tm, tn), lambda j, i, kk: (i, j)),
                scratch_shapes=scratch,
            ),
            compiler_params=pltpu.CompilerParams(
                dimension_semantics=("parallel", "parallel", "arbitrary"),
                vmem_limit_bytes=vmem_limit,
            ),
            cost_estimate=cost,
        )(x_p, w_chunks)

    if (m, prepared.output_dim) != (m_pad, n_pad):
        y = y[:m, :prepared.output_dim]
    return y


# ---------------------------------- test -------------------------------------

if __name__ == "__main__":
    key = jax.random.PRNGKey(0)
    k_w, k_x, k_w2, k_x2 = jax.random.split(key, 4)

    def _ref_bf16(x, weight):
        # Reference with the same bf16-cast operands, f32 accumulation.
        xf = x.astype(jnp.bfloat16).astype(jnp.float32)
        wf = weight.astype(jnp.bfloat16).astype(jnp.float32)
        return xf @ wf.T

    # --- Test 1: aligned shapes, single-K fast path (grid_n split to 2) -----
    input_dim, output_dim, lambda_value, M = 128, 256, 0.1, 32
    weight = init_ranpac_weight(k_w, input_dim, output_dim, lambda_value)
    x = jax.random.normal(k_x, (M, input_dim), dtype=jnp.float32)

    w_prep = prepare_ranpac_weight(weight)
    y = jax.block_until_ready(ranpac_forward(x, w_prep))
    assert y.shape == (M, output_dim)
    assert jnp.allclose(y, _ref_bf16(x, weight), atol=1e-2, rtol=1e-2), \
        "mismatch vs bf16 reference (single-K path)"
    # sanity vs full-f32 math (bf16 projection is a benign approximation)
    assert jnp.allclose(y, x @ weight.T, atol=0.5, rtol=5e-2), \
        "mismatch vs f32 reference (single-K path)"

    # --- Test 2: unaligned shapes, tiled-K reduction path --------------------
    input_dim2, output_dim2, M2 = 300, 200, 10
    weight2 = init_ranpac_weight(k_w2, input_dim2, output_dim2, lambda_value)
    x2 = jax.random.normal(k_x2, (M2, input_dim2), dtype=jnp.float32)

    # Small max_single_k/tk force the K-tiled accumulator path at test scale.
    w_prep2 = prepare_ranpac_weight(weight2, tk=128, max_single_k=128)

    # (a) f32 output -> accumulate directly into the resident output block.
    y2 = jax.block_until_ready(ranpac_forward(x2, w_prep2))
    assert y2.shape == (M2, output_dim2)
    assert jnp.allclose(y2, _ref_bf16(x2, weight2), atol=1e-2, rtol=1e-2), \
        "mismatch vs bf16 reference (tiled-K, f32-out path)"

    # (b) bf16 output -> scratch-accumulator path + halved writeback.
    y2_bf16 = jax.block_until_ready(
        ranpac_forward(x2, w_prep2, out_dtype=jnp.bfloat16))
    assert y2_bf16.shape == (M2, output_dim2)
    assert y2_bf16.dtype == jnp.bfloat16
    assert jnp.allclose(y2_bf16.astype(jnp.float32), y2, atol=0.3, rtol=2e-2), \
        "mismatch between bf16-out and f32-out results (tiled-K path)"

    print("KERNEL_OK")
</pallas_src>

<mosaic_0001>
module attributes {stable_mosaic.version = 11 : i64} {
  func.func @_ranpac_single_k_kernel(%arg0: i32, %arg1: i32, %arg2: memref<32x128xf32, #tpu.memory_space<vmem>>, %arg3: memref<1x128x128xbf16, #tpu.memory_space<vmem>>, %arg4: memref<32x128xf32, #tpu.memory_space<vmem>>) attributes {dimension_semantics = [#tpu.dimension_semantics<parallel>, #tpu.dimension_semantics<parallel>], iteration_bounds = array<i64: 2, 1>, scalar_prefetch = 0 : i64, scratch_operands = 0 : i64, tpu.core_type = #tpu.core_type<tc>, window_params = [{transform_indices = @transform_0, window_bounds = array<i64: 32, 128>}, {transform_indices = @transform_1, window_bounds = array<i64: 1, 128, 128>}, {transform_indices = @transform_2, window_bounds = array<i64: 32, 128>}]} {
    %c0 = arith.constant 0 : index
    %c0_0 = arith.constant 0 : index
    %0 = vector.load %arg2[%c0, %c0_0] : memref<32x128xf32, #tpu.memory_space<vmem>>, vector<32x128xf32>
    %1 = arith.truncf %0 : vector<32x128xf32> to vector<32x128xbf16>
    %c0_1 = arith.constant 0 : index
    %c0_2 = arith.constant 0 : index
    %c0_3 = arith.constant 0 : index
    %2 = vector.load %arg3[%c0_1, %c0_2, %c0_3] : memref<1x128x128xbf16, #tpu.memory_space<vmem>>, vector<1x128x128xbf16>
    %3 = vector.shape_cast %2 : vector<1x128x128xbf16> to vector<128x128xbf16>
    %cst = arith.constant dense<0.000000e+00> : vector<32x128xf32>
    %4 = tpu.matmul %1, %3, %cst {dimension_numbers = #tpu.dot_dimension_numbers<[1], [0], [0], [1], [0, 0, 1, 1], [], []>} : vector<32x128xbf16>, vector<128x128xbf16>, vector<32x128xf32> -> vector<32x128xf32>
    %c0_4 = arith.constant 0 : index
    %c0_5 = arith.constant 0 : index
    %5 = vector.load %arg4[%c0_4, %c0_5] : memref<32x128xf32, #tpu.memory_space<vmem>>, vector<32x128xf32>
    tpu.vector_store %arg4[%c0_4, %c0_5], %4 {strides = array<i32>} : memref<32x128xf32, #tpu.memory_space<vmem>>, vector<32x128xf32>,
    return
  }
  func.func @transform_0(%arg0: i32, %arg1: i32) -> (i32, i32) {
    %c0_i32 = arith.constant 0 : i32
    %c0_i32_0 = arith.constant 0 : i32
    return %arg1, %c0_i32 : i32, i32
  }
  func.func @transform_1(%arg0: i32, %arg1: i32) -> (i32, i32, i32) {
    %c0_i32 = arith.constant 0 : i32
    %c0_i32_0 = arith.constant 0 : i32
    %c0_i32_1 = arith.constant 0 : i32
    return %arg0, %c0_i32, %c0_i32_0 : i32, i32, i32
  }
  func.func @transform_2(%arg0: i32, %arg1: i32) -> (i32, i32) {
    %c0_i32 = arith.constant 0 : i32
    return %arg1, %arg0 : i32, i32
  }
}

</mosaic_0001>

<bundles_post_ra>
// kernel: tpu_custom_call.1
= control target key start
LH: loop header
LB: loop body
LE: loop exit
PB: predicated region body
PF: predicated region fallthrough
CT: control target
= control target key end

     0   :  { %7 = vsyncpa [#allocation3], 0  ;;  %s879_s0 = inlined_call_operand.hbm [shape: f32[32,128], index: 0, kind: input, shape index: {}]   ;;  %s880_s1 = inlined_call_operand.hbm [shape: bf16[2,128,128], index: 1, kind: input, shape index: {}]   ;;  %s881_s2 = inlined_call_operand.hbm [shape: f32[32,256], index: 2, kind: output, shape index: {}]  }
   0x1   :  { %8 = vsyncpa [#allocation6], 0 }
   0x2   :  { %10 = vsyncpa [#allocation6 + $0x1], 0 }
   0x3   :  { %11 = vsyncpa [#allocation4], 0 }
   0x4   :  { %13 = vsyncpa [#allocation4 + $0x1], 0  ;;  %s729_s9 = smov 0   ;;  %s731_s10 = smov 0  }
   0x5   :  { %s733_s11 = smov 0   ;;  %s735_s12 = smov 0  }
   0x6   :  { %s737_s13 = smov 0   ;;  %s739_s14 = smov 0  }
   0x7 LB: > { %s413_s15 = sadd.s32 4294967295, %s704_s14   ;;  %s414_s16 = sadd.s32 4294967294, %s704_s14   ;;  %s704_s14 = sphi %s739_s14, %s19_s14   ;;  %s700_s13 = sphi %s737_s13, %s893_s13   ;;  %s696_s12 = sphi %s735_s12, %s892_s12   ;;  %s692_s11 = sphi %s733_s11, %s891_s11   ;;  %s688_s10 = sphi %s731_s10, %s890_s10   ;;  %s684_s9 = sphi %s729_s9, %s889_s9  }
   0x8   : > { %p77_p0 = scmp.ne.s32.totalorder %s688_s10, %s684_s9  ;;  %p763_p1 = scmp.eq.s32.totalorder %s413_s15, 0 }
   0x9   : > { %p767_p2 = scmp.eq.s32.totalorder %s413_s15, 1  ;;  %p109_p3 = scmp.eq.s32.totalorder %s414_s16, 1 }
   0xa   : > { %p773_p4 = por %p763_p1, %p77_p0  ;;  %p415_p5 = scmp.ge.s32.totalorder %s704_s14, 1 }
   0xb   : > { %p778_p6 = por %p109_p3, %p77_p0  ;;  %p116_p7 = scmp.lt.s32.totalorder %s704_s14, 3 }
   0xc   : > { %s130_s23 = sshll.u32 %s879_s0, 4  ;;  %s706_s25 = smov [#allocation2]   ;;  %s131_s23 = int_to_ptr.hbm [resolvable:$true] %s130_s23 }
   0xd   : > { %p786_p8 = pnand %p415_p5, %p116_p7  ;;  %s132_s26 = sshll.u32 %s706_s25, 4  ;;  %s133_s26 = int_to_ptr.vmem [resolvable:$true] %s132_s26 }
   0xe   : > { %p417_p11 = scmp.ge.s32.totalorder %s704_s14, 2  ;;  %s707_s27 = smov 128  }
   0xf   : > { %p486_p9 = pneg %p786_p8  ;;  %s708_s28 = smov 8  }
  0x10   : > { %s31_s29 = sadd.s32 1, %s700_s13  ;;  %s64_s30 = sadd.s32 1, %s692_s11 }
  0x11   : > { %p487_p10 = pnand %p486_p9, %p763_p1  ;;  %p33_p12 = scmp.ge.s32.totalorder %s31_s29, 2 }
  0x12   : > { %p71_p13 = scmp.ne.s32.totalorder %s692_s11, %s688_s10  ;;  %p72_p0 = scmp.eq.s32.totalorder %s704_s14, 0 }
  0x13   : > { %489 = dma.hbm_to_vmem [thread:$0]  (!%p487_p10), %s131_s23, 512, %s133_s26, [#allocation3], %s707_s27, %s707_s27, %s708_s28  }
  0x14   : > { %s895_s29 = smov (%p33_p12, %s31_s29), 0  ;;  %p802_p3 = por %p72_p0, %p71_p13 }
  0x15   : > { %p808_p5 = por %p767_p2, %p71_p13  ;;  %s61_s5 = ssub.s32 %s700_s13, %s895_s29 }
  0x16   : > { %p499_p7 = scmp.lt.s32.totalorder %s704_s14, 2  ;;  %p62_p9 = scmp.eq.s32.totalorder %s61_s5, 0 }
  0x17   : > { %s146_s6 = sand.u32 1, %s692_s11   ;;  %s461_s15 = sshll.u32 %s700_s13, 6 }
  0x18   : > { %s418_s7 = sshll.u32 %s146_s6, 6  ;;  %s155_s22 = scalar_lea.hbm %s880_s1, %s461_s15 }
  0x19   : > { %s817_s8 = scalar_select %p62_p9, %s692_s11, %s64_s30  }
  0x1a   : > { %s150_s23 = scalar_lea.vmem [#allocation5], %s418_s7  ;;  %s156_s18 = sshll.u32 %s155_s22, 4  ;;  %s157_s18 = int_to_ptr.hbm [resolvable:$true] %s156_s18 }
  0x1b   : > { %s158_s25 = sshll.u32 %s150_s23, 4  ;;  %p491_p2 = pnand %p499_p7, %p802_p3  ;;  %s159_s25 = int_to_ptr.vmem [resolvable:$true] %s158_s25 }
  0x1c   : > { %s147_s26 = scalar_lea.sflag [#allocation6], %s146_s6  ;;  %s709_s27 = smov 64  }
  0x1d   : > { %s710_s28 = smov 4   ;;  %170 = sbr.rel (%p786_p8) target bundleno = 211 (0xd3), region = 28 }
  0x1e   : > { %493 = dma.hbm_to_vmem [thread:$0]  (!%p491_p2), %s157_s18, 1024, %s159_s25, %s147_s26, %s709_s27, %s709_s27, %s710_s28  }
  0x22   : > { %671 = dma.done.wait (%p763_p1), [#allocation3], 512  }
  0x23   : > { %673 = vsyncadd (%p763_p1), [#allocation3], 4294966784  ;;  %s832_s30 = sand.u32 1, %s688_s10  }
  0x24   : > { %s423_s3 = sshll.u32 %s832_s30, 6  ;;  %s178_s5 = scalar_lea.sflag [#allocation6], %s832_s30 }
  0x25   : > { %s181_s6 = scalar_lea.vmem [#allocation5], %s423_s3 }
  0x26   : > { %675 = dma.done.wait (%p773_p4), %s178_s5, 1024  }
  0x27   : > { %677 = vsyncadd (%p773_p4), %s178_s5, 4294966272  ;;  %v469_v0 = vld [vmem:[%s181_s6 + $0x38] sm:$0xff]  ;;  %v468_v1 = vld [vmem:[%s181_s6 + $0x30] sm:$0xff]  ;;  %s424_s17 = sshll.u32 %s832_s30, 5  ;;  %s458_s19 = sshll.u32 %s696_s12, 3 }
  0x28   : > { %275 = vmatpush.bf16.msra.mxu0 %v469_v0  ;;  %470 = vmatpush.bf16.msra.mxu1 %v469_v0  ;;  %v467_v2 = vld [vmem:[%s181_s6 + $0x28] sm:$0xff]  ;;  %v466_v3 = vld [vmem:[%s181_s6 + $0x20] sm:$0xff]  ;;  %v465_v4 = vld [vmem:[%s181_s6 + $0x18] sm:$0xff]  ;;  %s202_s24 = scalar_lea.vmem [#allocation7], %s424_s17  ;;  %s312_s16 = scalar_lea.hbm %s881_s2, %s458_s19 }
  0x29   : > { %v464_v5 = vld [vmem:[%s181_s6 + $0x10] sm:$0xff]  ;;  %v463_v6 = vld [vmem:[%s181_s6 + $0x8] sm:$0xff]  ;;  %v462_v7 = vld [vmem:[%s181_s6] sm:$0xff]  ;;  %s313_s21 = sshll.u32 %s202_s24, 4  ;;  %s315_s22 = sshll.u32 %s312_s16, 4  ;;  %s314_s21 = int_to_ptr.vmem [resolvable:$true] %s313_s21  ;;  %s316_s22 = int_to_ptr.hbm [resolvable:$true] %s315_s22 }
  0x2a   : > { %v205_v8 = vld [vmem:[#allocation2] sm:$0xff]  ;;  %v206_v9 = vld [vmem:[#allocation2 + $0x8] sm:$0xff]  ;;  %v207_v10 = vld [vmem:[#allocation2 + $0x10] sm:$0xff]  ;;  %s299_s23 = scalar_lea.sflag [#allocation4], %s832_s30  ;;  %s632_s12 = sshra.s32 %s316_s22, 4  ;;  %s633_s12 = int_to_ptr.hbm [resolvable:$true] %s632_s12 }
  0x2b   : > { %v208_v11 = vld [vmem:[#allocation2 + $0x18] sm:$0xff]  ;;  %v209_v12 = vpack.c.bf16 %v206_v9, %v205_v8  ;;  %s634_s25 = scalar_lea.hbm %s633_s12, 32  ;;  %s638_s27 = scalar_lea.hbm %s881_s2, 64 }
  0x2c   : > { %276 = vmatpush.bf16.msra.mxu0 %v468_v1  ;;  %471 = vmatpush.bf16.msra.mxu1 %v468_v1  ;;  %v210_v13 = vpack.c.bf16 %v208_v11, %v207_v10  ;;  %p635_p1 = scmp.ne.s32.totalorder %s633_s12, %s634_s25  ;;  %p639_p10 = scmp.lt.s32.totalorder %s633_s12, %s881_s2 }
  0x2d   : > { %p640_p12 = scmp.lt.s32.totalorder %s638_s27, %s634_s25 }
  0x2e   : > { %p636_p4 = pnand %p635_p1, %p808_p5 }
  0x2f   : > { %p641_p13 = por %p640_p12, %p639_p10 }
  0x30   : > { %277 = vmatpush.bf16.msra.mxu0 %v467_v2  ;;  %472 = vmatpush.bf16.msra.mxu1 %v467_v2  ;;  %p637_p8 = pneg %p636_p4 }
  0x32   : > { %p642_p0 = pnand %p641_p13, %p637_p8 }
  0x34   : > { %278 = vmatpush.bf16.msra.mxu0 %v466_v3  ;;  %473 = vmatpush.bf16.msra.mxu1 %v466_v3 }
  0x38   : > { %279 = vmatpush.bf16.msra.mxu0 %v465_v4  ;;  %474 = vmatpush.bf16.msra.mxu1 %v465_v4 }
  0x3c   : > { %280 = vmatpush.bf16.msra.mxu0 %v464_v5  ;;  %475 = vmatpush.bf16.msra.mxu1 %v464_v5 }
  0x40   : > { %281 = vmatpush.bf16.msra.mxu0 %v463_v6  ;;  %476 = vmatpush.bf16.msra.mxu1 %v463_v6 }
  0x44   : > { %282 = vmatpush.bf16.msra.mxu0 %v462_v7  ;;  %477 = vmatpush.bf16.msra.mxu1 %v462_v7 }
  0x47   : > { %283 = vmatmul.bf16.vlgmr.msra.gmra.mxu0 %v209_v12  ;;  %288 = vmatmul.bf16.vlgmr.msra.gmra.mxu1 %v210_v13 }
  0xc4   : > { %v284_v14 = vpop.f32.mrf.mxu0  ;;  %v289_v15 = vpop.f32.mrf.mxu1 }
  0xc5   : > { %294 = vst [vmem:[%s202_s24] sm:$0xff] %v284_v14 }
  0xc6   : > { %296 = vst [vmem:[%s202_s24 + $0x10] sm:$0xff] %v289_v15 }
  0xcc   : > { %v286_v16 = vpop.f32.mrf.mxu0  ;;  %v291_v17 = vpop.f32.mrf.mxu1 }
  0xcd   : > { %295 = vst [vmem:[%s202_s24 + $0x8] sm:$0xff] %v286_v16 }
  0xce   : > { %297 = vst [vmem:[%s202_s24 + $0x18] sm:$0xff] %v291_v17 }
  0xcf   : > { %645 = shalt.err (!%p642_p0)
}
  0xd0   : > { %s711_s30 = smov 128   ;;  %s712_s5 = smov 256  }
  0xd1   : > { %s713_s6 = smov 8  }
  0xd2   : > { %484 = dma.vmem_to_hbm [thread:$0]  (%p808_p5), %s314_s21, 512, %s316_s22, %s299_s23, %s711_s30, %s712_s5, %s713_s6  }
  0xd3 PF: > { %s330_s17 = sand.u32 1, %s684_s9   ;;  %p495_p3 = pnand %p417_p11, %p778_p6 }
  0xd4   : > { %s331_s19 = scalar_lea.sflag [#allocation4], %s330_s17 }
  0xd5   : > { %p496_p7 = pneg %p495_p3 }
  0xd7   : > { %679 = dma.done.wait (%p496_p7), %s331_s19, 512  }
  0xd8   : > { %681 = vsyncadd (%p496_p7), %s331_s19, 4294966784  ;;  %s19_s14 = sadd.s32 1, %s704_s14   ;;  %s889_s9 = smov %s688_s10 }
  0xd9   : > { %p16_p9 = scmp.ge.s32.totalorder %s19_s14, 4   ;;  %s890_s10 = smov %s692_s11 }
  0xda   : > { %s891_s11 = smov %s817_s8  ;;  %s892_s12 = smov %s700_s13 }
  0xdb   : > { %s893_s13 = smov %s895_s29  ;;  %18 = sbr.rel (!%p16_p9) target bundleno = 7 (0x7), region = 79 }
  0xe0   :  { %337 = vsyncpa [#allocation3], 1 }
  0xe1   :  { %339 = vsyncpa [#allocation3 + $0x1], 1 }
  0xe2   :  { %340 = vsyncpa [#allocation6], 1 }
  0xe3   :  { %342 = vsyncpa [#allocation6 + $0x1], 1 }
  0xe4   :  { %343 = vsyncpa [#allocation4], 1 }
  0xe5   :  { %345 = vsyncpa [#allocation4 + $0x1], 1 }

</bundles_post_ra>
